<compile_context>
chip_gen: v6e
topology: v6e:2x2x1
jax: 0.10.0
libtpu: 0.0.40
codegen_flags: <defaults>
</compile_context>

<pallas_src>
import functools

import jax
import jax.numpy as jnp
import numpy as np
from jax.experimental import pallas as pl
from jax.experimental.pallas import tpu as pltpu


_TARGET_INFLIGHT_BYTES = 16 * 1024 * 1024   # double-buffered bytes in flight
_VMEM_LIMIT_BYTES = 48 * 1024 * 1024        # safe on v7x (64 MiB physical)


# ------------------------------------------------------------------ layout --
def space_to_window(x):
    """(B, C, H, W) -> (4, M) window-major flat; w = 2*di + dj, M = B*C*H2*W2."""
    B, C, H, W = x.shape
    H2, W2 = H // 2, W // 2
    x = x.reshape(B * C, H2, 2, W2, 2)            # (n, i, di, j, dj)
    x = x.transpose(2, 4, 0, 1, 3)                # (di, dj, n, i, j)
    return x.reshape(4, B * C * H2 * W2)


def window_to_space(xw, B, C, H, W):
    """Inverse of space_to_window (only for state inspection / verification)."""
    H2, W2 = H // 2, W // 2
    xw = xw.reshape(2, 2, B * C, H2, W2)          # (di, dj, n, i, j)
    xw = xw.transpose(2, 3, 0, 4, 1)              # (n, i, di, j, dj)
    return xw.reshape(B, C, H, W)


def lipool_init_state(B, C, H, W, dtype=jnp.float32):
    """Fresh sumspike state (== LIPool.reset()), stored window-major flat."""
    assert H % 2 == 0 and W % 2 == 0, "LIPool kernel requires even H, W"
    # TODO(synk): PyTorch MaxPool2d(2,2) floors odd spatial dims; add crop path.
    return jnp.zeros((4, B * C * (H // 2) * (W // 2)), dtype=dtype)


# ------------------------------------------------------------------ tiling --
def _choose_tiling(M, itemsize):
    """Pick (lane, rows, tile_rows) for the flattened (4, M) layout."""
    # Lane (last) dim: a multiple of 128 dividing M -> unmasked dense stores.
    lane = None
    for cand in (512, 1024, 2048, 256, 128):
        if M % cand == 0:
            lane = cand
            break
    if lane is None:
        lane = M                      # full-extent last dim (legal fallback)
    rows = M // lane

    # In-flight bytes ~= 2 buffers * (x + s + snew : 4 windows each, out : 1).
    bytes_per_tile_elem = 2 * (3 * 4 + 1) * itemsize
    max_tr = max(1, _TARGET_INFLIGHT_BYTES // (bytes_per_tile_elem * lane))

    tr = rows
    for cand_tr in range(min(rows, max_tr), 0, -1):
        if rows % cand_tr == 0 and (cand_tr % 8 == 0 or cand_tr == rows):
            tr = cand_tr
            break
    return lane, rows, tr


# ------------------------------------------------------------------ kernel --
def _lipool_kernel(x_ref, s_ref, out_ref, snew_ref):
    # x_ref, s_ref, snew_ref : (4, TR, LANE)     out_ref : (TR, LANE)
    # Accumulate / compare in f32 (no bf16 VPU on v5e); store back in io dtype.
    s = s_ref[...].astype(jnp.float32) + x_ref[...].astype(jnp.float32)
    # Window axis (size 4) lives outside the sublane/lane dims -> pure VPU max.
    out = jnp.maximum(jnp.maximum(s[0], s[1]), jnp.maximum(s[2], s[3]))
    out_ref[...] = out.astype(out_ref.dtype)
    snew_ref[...] = (s - out[None, :, :]).astype(snew_ref.dtype)


# ----------------------------------------------------------------- wrapper --
@functools.partial(jax.jit, donate_argnums=(1,))
def lipool_forward(x, state_w):
    """One LIPool timestep.

    x        : (B, C, H, W) incoming spikes / activations (NCHW).
    state_w  : (4, M) window-major sumspike state (see lipool_init_state).
    Returns (out, new_state_w) with out : (B, C, H//2, W//2).
    """
    B, C, H, W = x.shape
    assert H % 2 == 0 and W % 2 == 0, "LIPool kernel requires even H, W"
    H2, W2 = H // 2, W // 2
    M = B * C * H2 * W2
    assert state_w.shape == (4, M), "state layout mismatch; use lipool_init_state"

    dtype = x.dtype
    lane, rows, tr = _choose_tiling(M, jnp.dtype(dtype).itemsize)

    xw = space_to_window(x).reshape(4, rows, lane)   # one layout pass (x only)
    sw = state_w.reshape(4, rows, lane)              # free (contiguous reshape)

    out_t, snew = pl.pallas_call(
        _lipool_kernel,
        out_shape=(
            jax.ShapeDtypeStruct((rows, lane), dtype),
            jax.ShapeDtypeStruct((4, rows, lane), dtype),
        ),
        grid=(rows // tr,),
        in_specs=[
            pl.BlockSpec((4, tr, lane), lambda m: (0, m, 0)),
            pl.BlockSpec((4, tr, lane), lambda m: (0, m, 0)),
        ],
        out_specs=(
            pl.BlockSpec((tr, lane), lambda m: (m, 0)),
            pl.BlockSpec((4, tr, lane), lambda m: (0, m, 0)),
        ),
        input_output_aliases={1: 1},          # sumspike state updated in place
        compiler_params=pltpu.CompilerParams(
            dimension_semantics=("parallel",),
            vmem_limit_bytes=_VMEM_LIMIT_BYTES,
        ),
    )(xw, sw)

    # Flat window-major max already IS pooled-NCHW row-major: free reshape.
    out = out_t.reshape(B, C, H2, W2)
    return out, snew.reshape(4, M)


# --------------------------------------------------------------- reference --
def _lipool_reference_step(x, sumspike):
    B, C, H, W = x.shape
    s = sumspike + x
    s4 = s.reshape(B, C, H // 2, 2, W // 2, 2)
    out = s4.max(axis=(3, 5))                                   # MaxPool2d(2)
    up = jnp.broadcast_to(out[:, :, :, None, :, None],
                          (B, C, H // 2, 2, W // 2, 2)).reshape(B, C, H, W)
    return out, s - up                                          # nearest 2x up


def _run_case(key, B, C, H, W, T):
    keys = jax.random.split(key, T)
    xs = [jax.random.normal(k, (B, C, H, W), dtype=jnp.float32) for k in keys]

    state_w = lipool_init_state(B, C, H, W)                 # persistent state
    sumspike_ref = jnp.zeros((B, C, H, W), dtype=jnp.float32)

    for t in range(T):
        out, state_w = lipool_forward(xs[t], state_w)
        jax.block_until_ready((out, state_w))
        out_ref, sumspike_ref = _lipool_reference_step(xs[t], sumspike_ref)

        assert out.shape == (B, C, H // 2, W // 2)
        np.testing.assert_allclose(np.asarray(out), np.asarray(out_ref),
                                   rtol=1e-6, atol=1e-6)
        state_nchw = window_to_space(state_w, B, C, H, W)
        np.testing.assert_allclose(np.asarray(state_nchw),
                                   np.asarray(sumspike_ref),
                                   rtol=1e-6, atol=1e-6)


# ------------------------------------------------------------------- main ---
if __name__ == "__main__":
    key = jax.random.PRNGKey(0)
    k1, k2, k3 = jax.random.split(key, 3)

    # Primary small shape from the module spec; 3 SNN timesteps with
    # persistent window-major state.
    _run_case(k1, B=2, C=4, H=16, W=16, T=3)
    # Exercises multi-row lane-dense tiling (single grid step).
    _run_case(k2, B=4, C=8, H=32, W=32, T=1)
    # Exercises the multi-grid-step ("parallel" axis) tiling path.
    _run_case(k3, B=8, C=32, H=64, W=64, T=1)

    print("KERNEL_OK")
</pallas_src>

<mosaic_0001>
module attributes {stable_mosaic.version = 11 : i64} {
  func.func @_lipool_kernel(%arg0: i32, %arg1: memref<4x1x512xf32, #tpu.memory_space<vmem>>, %arg2: memref<4x1x512xf32, #tpu.memory_space<vmem>>, %arg3: memref<1x512xf32, #tpu.memory_space<vmem>>, %arg4: memref<4x1x512xf32, #tpu.memory_space<vmem>>) attributes {dimension_semantics = [#tpu.dimension_semantics<parallel>], iteration_bounds = array<i64: 1>, scalar_prefetch = 0 : i64, scratch_operands = 0 : i64, tpu.core_type = #tpu.core_type<tc>, window_params = [{transform_indices = @transform_0, window_bounds = array<i64: 4, 1, 512>}, {transform_indices = @transform_1, window_bounds = array<i64: 4, 1, 512>}, {transform_indices = @transform_2, window_bounds = array<i64: 1, 512>}, {transform_indices = @transform_3, window_bounds = array<i64: 4, 1, 512>}]} {
    %c0 = arith.constant 0 : index
    %c0_0 = arith.constant 0 : index
    %c0_1 = arith.constant 0 : index
    %0 = vector.load %arg2[%c0, %c0_0, %c0_1] : memref<4x1x512xf32, #tpu.memory_space<vmem>>, vector<4x1x512xf32>
    %c0_2 = arith.constant 0 : index
    %c0_3 = arith.constant 0 : index
    %c0_4 = arith.constant 0 : index
    %1 = vector.load %arg1[%c0_2, %c0_3, %c0_4] : memref<4x1x512xf32, #tpu.memory_space<vmem>>, vector<4x1x512xf32>
    %2 = arith.addf %0, %1 : vector<4x1x512xf32>
    %3 = vector.extract_strided_slice %2 {offsets = [0, 0, 0], sizes = [1, 1, 512], strides = [1, 1, 1]} : vector<4x1x512xf32> to vector<1x1x512xf32>
    %4 = vector.shape_cast %3 : vector<1x1x512xf32> to vector<1x512xf32>
    %5 = vector.extract_strided_slice %2 {offsets = [1, 0, 0], sizes = [1, 1, 512], strides = [1, 1, 1]} : vector<4x1x512xf32> to vector<1x1x512xf32>
    %6 = vector.shape_cast %5 : vector<1x1x512xf32> to vector<1x512xf32>
    %7 = arith.maximumf %4, %6 : vector<1x512xf32>
    %8 = vector.extract_strided_slice %2 {offsets = [2, 0, 0], sizes = [1, 1, 512], strides = [1, 1, 1]} : vector<4x1x512xf32> to vector<1x1x512xf32>
    %9 = vector.shape_cast %8 : vector<1x1x512xf32> to vector<1x512xf32>
    %10 = vector.extract_strided_slice %2 {offsets = [3, 0, 0], sizes = [1, 1, 512], strides = [1, 1, 1]} : vector<4x1x512xf32> to vector<1x1x512xf32>
    %11 = vector.shape_cast %10 : vector<1x1x512xf32> to vector<1x512xf32>
    %12 = arith.maximumf %9, %11 : vector<1x512xf32>
    %13 = arith.maximumf %7, %12 : vector<1x512xf32>
    %c0_5 = arith.constant 0 : index
    %c0_6 = arith.constant 0 : index
    %14 = vector.load %arg3[%c0_5, %c0_6] : memref<1x512xf32, #tpu.memory_space<vmem>>, vector<1x512xf32>
    tpu.vector_store %arg3[%c0_5, %c0_6], %13 {strides = array<i32>} : memref<1x512xf32, #tpu.memory_space<vmem>>, vector<1x512xf32>,
    %15 = vector.shape_cast %13 : vector<1x512xf32> to vector<1x1x512xf32>
    %16 = vector.broadcast %15 : vector<1x1x512xf32> to vector<4x1x512xf32>
    %17 = arith.subf %2, %16 : vector<4x1x512xf32>
    %c0_7 = arith.constant 0 : index
    %c0_8 = arith.constant 0 : index
    %c0_9 = arith.constant 0 : index
    %18 = vector.load %arg4[%c0_7, %c0_8, %c0_9] : memref<4x1x512xf32, #tpu.memory_space<vmem>>, vector<4x1x512xf32>
    tpu.vector_store %arg4[%c0_7, %c0_8, %c0_9], %17 {strides = array<i32>} : memref<4x1x512xf32, #tpu.memory_space<vmem>>, vector<4x1x512xf32>,
    return
  }
  func.func @transform_0(%arg0: i32) -> (i32, i32, i32) {
    %c0_i32 = arith.constant 0 : i32
    %c0_i32_0 = arith.constant 0 : i32
    %c0_i32_1 = arith.constant 0 : i32
    return %c0_i32, %arg0, %c0_i32_0 : i32, i32, i32
  }
  func.func @transform_1(%arg0: i32) -> (i32, i32, i32) {
    %c0_i32 = arith.constant 0 : i32
    %c0_i32_0 = arith.constant 0 : i32
    %c0_i32_1 = arith.constant 0 : i32
    return %c0_i32, %arg0, %c0_i32_0 : i32, i32, i32
  }
  func.func @transform_2(%arg0: i32) -> (i32, i32) {
    %c0_i32 = arith.constant 0 : i32
    %c0_i32_0 = arith.constant 0 : i32
    return %arg0, %c0_i32 : i32, i32
  }
  func.func @transform_3(%arg0: i32) -> (i32, i32, i32) {
    %c0_i32 = arith.constant 0 : i32
    %c0_i32_0 = arith.constant 0 : i32
    %c0_i32_1 = arith.constant 0 : i32
    return %c0_i32, %arg0, %c0_i32_0 : i32, i32, i32
  }
}

</mosaic_0001>

<bundles_post_ra>
// kernel: lipool_forward.1
= control target key start
LH: loop header
LB: loop body
LE: loop exit
PB: predicated region body
PF: predicated region fallthrough
CT: control target
= control target key end

     0   :  { %v28_v10 = vlaneseq  ;;  %s108_s0 = inlined_call_operand.vmem [shape: f32[4,1,512], index: 0, kind: input, shape index: {}]   ;;  %s109_s1 = inlined_call_operand.vmem [shape: f32[4,1,512], index: 1, kind: input, shape index: {}, may-alias: {1,3}]   ;;  %s110_s2 = inlined_call_operand.vmem [shape: f32[1,512], index: 2, kind: output, shape index: {0}]   ;;  %s111_s3 = inlined_call_operand.vmem [shape: f32[4,1,512], index: 3, kind: output, shape index: {1}, may-alias: {1,3}]  }
   0x1   :  { %v13_v0 = vld [vmem:[%s109_s1] sm:$0xf]  ;;  %v14_v1 = vld [vmem:[%s109_s1 + $0x4] sm:$0xf]  ;;  %v15_v2 = vld [vmem:[%s109_s1 + $0x8] sm:$0xf] }
   0x2   :  { %v16_v3 = vld [vmem:[%s109_s1 + $0xc] sm:$0xf]  ;;  %v17_v4 = vld [vmem:[%s108_s0] sm:$0xf]  ;;  %v18_v5 = vld [vmem:[%s108_s0 + $0x4] sm:$0xf] }
   0x3   :  { %v19_v6 = vld [vmem:[%s108_s0 + $0x8] sm:$0xf]  ;;  %v20_v7 = vld [vmem:[%s108_s0 + $0xc] sm:$0xf]  ;;  %v21_v8 = vadd.f32 %v17_v4, %v13_v0  ;;  %v22_v9 = vadd.f32 %v18_v5, %v14_v1  ;;  %vm30_vm0 = vcmp.lt.s32.totalorder %v28_v10, 512 }
   0x4   :  { %v23_v11 = vadd.f32 %v19_v6, %v15_v2  ;;  %v24_v12 = vadd.f32 %v20_v7, %v16_v3 }
   0x5   :  { %v25_v13 = vmax.f32 %v21_v8, %v22_v9 }
   0x6   :  { %v26_v14 = vmax.f32 %v23_v11, %v24_v12 }
   0x8   :  { %v27_v15 = vmax.f32 %v25_v13, %v26_v14 }
   0xa   :  { %32 = vst.msk [vmem:[%s110_s2] sm:$0xf] %vm30_vm0, %v27_v15  ;;  %v33_v16 = vsub.f32 %v21_v8, %v27_v15  ;;  %v34_v17 = vsub.f32 %v22_v9, %v27_v15  ;;  %v35_v18 = vsub.f32 %v23_v11, %v27_v15  ;;  %v36_v19 = vsub.f32 %v24_v12, %v27_v15 }
   0xc   :  { %37 = vst.msk [vmem:[%s111_s3] sm:$0xf] %vm30_vm0, %v33_v16  ;;  %38 = vst.msk [vmem:[%s111_s3 + $0x4] sm:$0xf] %vm30_vm0, %v34_v17 }
   0xd   :  { %39 = vst.msk [vmem:[%s111_s3 + $0x8] sm:$0xf] %vm30_vm0, %v35_v18  ;;  %40 = vst.msk [vmem:[%s111_s3 + $0xc] sm:$0xf] %vm30_vm0, %v36_v19 }

</bundles_post_ra>
